<compile_context>
chip_gen: v7x
topology: tpu7x:2x2x1
jax: 0.10.0
libtpu: 0.0.40
codegen_flags: <defaults>
</compile_context>

<pallas_src>
import jax
import jax.numpy as jnp
from jax.experimental import pallas as pl
from jax.experimental.pallas import tpu as pltpu

_LANES = 128                     # vreg lane width
_DEFAULT_TM = 2048               # 2048 x 128 f32 = 1 MiB per block
_MIN_TM = 512                    # never shrink blocks below 256 KiB
_MIN_PALLAS_ELEMENTS = 1 << 16   # below this, fused XLA beats a kernel launch


def _round_up(a, m):
    return ((a + m - 1) // m) * m


def _linear11_kernel(p_ref, x_ref, o_ref):
    # p_ref: (2,) = [w, b] scalars in SMEM.
    # x_ref / o_ref: (TM, 128) lane-dense f32 tiles in VMEM.
    o_ref[...] = x_ref[...] * p_ref[0] + p_ref[1]


def dummy_model_forward(x, weight, bias, *, tm=_DEFAULT_TM,
                        min_pallas_elements=_MIN_PALLAS_ELEMENTS):
    """Apply Linear(1, 1) to x of shape (..., 1) via a Pallas TPU kernel.

    Args:
      x:      (..., 1) float32
      weight: (1, 1)   float32  -- torch nn.Linear weight
      bias:   (1,)     float32  -- torch nn.Linear bias
    Returns:
      array with the same shape as x
    """
    assert x.shape[-1] == 1
    assert weight.shape == (1, 1)
    assert bias.shape == (1,)
    assert x.dtype == jnp.float32, "tiling assumes float32 (8-sublane grain)"

    n = x.size
    orig_shape = x.shape

    # Tiny inputs: skip Pallas entirely; XLA fuses the scalar FMA for free.
    if n < min_pallas_elements:
        return x * weight[0, 0] + bias[0]

    flat = x.reshape(-1)

    # Lane-dense slab: pad only to the 128-lane grain (at most 127 elements),
    # never up to a multiple of the block size — edge blocks are masked.
    rows = pl.cdiv(n, _LANES)
    padded = rows * _LANES
    if padded != n:
        flat = jnp.pad(flat, (0, padded - n))
    x2d = flat.reshape(rows, _LANES)

    # Tile rows: prefer ~1 MiB blocks; shrink (floor 256 KiB) so mid-sized
    # inputs still yield >= ~8 grid blocks (v7x has 2 TensorCores).
    tm_eff = max(_MIN_TM, min(tm, 8 * pl.cdiv(rows, 64)))
    tm_eff = min(tm_eff, _round_up(rows, 8))
    grid = (pl.cdiv(rows, tm_eff),)

    # Pack weight & bias into a single (2,) SMEM scalar array.
    params = jnp.concatenate([weight.reshape(-1), bias.reshape(-1)])

    out2d = pl.pallas_call(
        _linear11_kernel,
        out_shape=jax.ShapeDtypeStruct((rows, _LANES), x.dtype),
        grid=grid,
        in_specs=[
            pl.BlockSpec(memory_space=pltpu.MemorySpace.SMEM),
            pl.BlockSpec((tm_eff, _LANES), lambda i: (i, 0)),
        ],
        out_specs=pl.BlockSpec((tm_eff, _LANES), lambda i: (i, 0)),
        compiler_params=pltpu.CompilerParams(
            dimension_semantics=("parallel",),
        ),
        cost_estimate=pl.CostEstimate(
            flops=2 * padded,
            transcendentals=0,
            bytes_accessed=8 * padded,  # 4B read + 4B write per element
        ),
    )(params, x2d)

    if padded == n:
        # No lane padding was added: reshape is free, no extra HBM pass.
        return out2d.reshape(orig_shape)
    return out2d.reshape(-1)[:n].reshape(orig_shape)


# TODO(synk): execution_count / flag_begin / flag_end are host-side Python
# bookkeeping on the nn.Module, not part of the forward math — not translated.

if __name__ == "__main__":
    key = jax.random.PRNGKey(0)
    kx1, kx2, kw, kb = jax.random.split(key, 4)

    # Deterministic synthetic parameters (nn.Linear(1,1): weight (1,1), bias (1,)).
    weight = jax.random.normal(kw, (1, 1), dtype=jnp.float32)
    bias = jax.random.normal(kb, (1,), dtype=jnp.float32)

    # 1) Small batch matching the DummyModel test usage -> fused fast path.
    x_small = jax.random.normal(kx1, (8, 1), dtype=jnp.float32)
    out_small = jax.block_until_ready(dummy_model_forward(x_small, weight, bias))
    ref_small = x_small @ weight.T + bias
    assert out_small.shape == (8, 1)
    assert jnp.allclose(out_small, ref_small, atol=1e-6, rtol=1e-6)

    # 2) Larger batch forced through the Pallas kernel: exercises lane padding,
    #    a multi-block grid, and the masked partial edge block.
    batch = 200_000
    x_big = jax.random.normal(kx2, (batch, 1), dtype=jnp.float32)
    out_big = jax.block_until_ready(
        dummy_model_forward(x_big, weight, bias, min_pallas_elements=0))
    ref_big = x_big @ weight.T + bias
    assert out_big.shape == (batch, 1)
    assert jnp.allclose(out_big, ref_big, atol=1e-5, rtol=1e-5)

    print("KERNEL_OK")
</pallas_src>

<mosaic_0001>
module attributes {stable_mosaic.version = 11 : i64} {
  func.func @_linear11_kernel(%arg0: i32, %arg1: memref<2xf32, #tpu.memory_space<smem>>, %arg2: memref<512x128xf32, #tpu.memory_space<vmem>>, %arg3: memref<512x128xf32, #tpu.memory_space<vmem>>) attributes {dimension_semantics = [#tpu.dimension_semantics<parallel>], iteration_bounds = array<i64: 4>, scalar_prefetch = 0 : i64, scratch_operands = 0 : i64, tpu.core_type = #tpu.core_type<tc>, window_params = [{transform_indices = @transform_0, window_bounds = array<i64: 2>}, {transform_indices = @transform_1, window_bounds = array<i64: 512, 128>}, {transform_indices = @transform_2, window_bounds = array<i64: 512, 128>}]} {
    %c0 = arith.constant 0 : index
    %c0_0 = arith.constant 0 : index
    %0 = vector.load %arg2[%c0, %c0_0] : memref<512x128xf32, #tpu.memory_space<vmem>>, vector<512x128xf32>
    %c0_1 = arith.constant 0 : index
    %1 = memref.load %arg1[%c0_1] : memref<2xf32, #tpu.memory_space<smem>>
    %2 = vector.broadcast %1 : f32 to vector<512x128xf32>
    %3 = arith.mulf %0, %2 : vector<512x128xf32>
    %c1 = arith.constant 1 : index
    %4 = memref.load %arg1[%c1] : memref<2xf32, #tpu.memory_space<smem>>
    %5 = vector.broadcast %4 : f32 to vector<512x128xf32>
    %6 = arith.addf %3, %5 : vector<512x128xf32>
    %c0_2 = arith.constant 0 : index
    %c0_3 = arith.constant 0 : index
    %7 = vector.load %arg3[%c0_2, %c0_3] : memref<512x128xf32, #tpu.memory_space<vmem>>, vector<512x128xf32>
    tpu.vector_store %arg3[%c0_2, %c0_3], %6 {strides = array<i32>} : memref<512x128xf32, #tpu.memory_space<vmem>>, vector<512x128xf32>,
    return
  }
  func.func @transform_0(%arg0: i32) -> i32 {
    %c0_i32 = arith.constant 0 : i32
    %c0_i32_0 = arith.constant 0 : i32
    return %c0_i32 : i32
  }
  func.func @transform_1(%arg0: i32) -> (i32, i32) {
    %c0_i32 = arith.constant 0 : i32
    %c0_i32_0 = arith.constant 0 : i32
    return %arg0, %c0_i32 : i32, i32
  }
  func.func @transform_2(%arg0: i32) -> (i32, i32) {
    %c0_i32 = arith.constant 0 : i32
    %c0_i32_0 = arith.constant 0 : i32
    return %arg0, %c0_i32 : i32, i32
  }
}

</mosaic_0001>

<bundles_post_ra>
// kernel: tpu_custom_call.1
= control target key start
LH: loop header
LB: loop body
LE: loop exit
PB: predicated region body
PF: predicated region fallthrough
CT: control target
= control target key end

     0   :  { %7 = vsyncpa [#allocation5], 0  ;;  %s1241_s0 = inlined_call_operand.hbm [shape: f32[2], index: 0, kind: input, shape index: {}]   ;;  %s1242_s1 = inlined_call_operand.hbm [shape: f32[1563,128], index: 1, kind: input, shape index: {}]   ;;  %s1243_s2 = inlined_call_operand.hbm [shape: f32[1563,128], index: 2, kind: output, shape index: {}]  }
   0x1   :  { %8 = vsyncpa [#allocation3], 0 }
   0x2   :  { %10 = vsyncpa [#allocation3 + $0x1], 0 }
   0x3   :  { %11 = vsyncpa [#allocation4], 0 }
   0x4   :  { %13 = vsyncpa [#allocation4 + $0x1], 0  ;;  %s771_s9 = smov 0   ;;  %s773_s10 = smov 0  }
   0x5   :  { %s775_s11 = smov 0   ;;  %s777_s12 = smov 0  }
   0x6 LB: > { %s792_s13 = sadd.s32 4294967295, %s747_s12   ;;  %s555_s14 = sadd.s32 4294967294, %s747_s12   ;;  %s747_s12 = sphi %s777_s12, %s1257_s12   ;;  %s743_s11 = sphi %s775_s11, %s1256_s11   ;;  %s739_s10 = sphi %s773_s10, %s1255_s10   ;;  %s735_s9 = sphi %s771_s9, %s1254_s9  }
   0x7   : > { %s796_s15 = sadd.s32 1, %s747_s12   ;;  %s47_s16 = sadd.s32 1, %s743_s11 }
   0x8   : > { %s44_s17 = ssub.s32 %s747_s12, %s796_s15  ;;  %p54_p0 = scmp.ne.s32.totalorder %s743_s11, %s739_s10 }
   0x9   : > { %p45_p1 = scmp.eq.s32.totalorder %s44_s17, 0  ;;  %p55_p2 = scmp.eq.s32.totalorder %s747_s12, 0 }
   0xa   : > { %p60_p3 = scmp.ne.s32.totalorder %s739_s10, %s735_s9  ;;  %p1244_p4 = scmp.eq.s32.totalorder %s792_s13, 0 }
   0xb   : > { %s808_s18 = scalar_select %p45_p1, %s743_s11, %s47_s16  }
   0xc   : > { %p810_p5 = por %p55_p2, %p54_p0  ;;  %p816_p6 = por %p1244_p4, %p60_p3 }
   0xd   : > { %p84_p7 = scmp.eq.s32.totalorder %s792_s13, 3  ;;  %p90_p8 = scmp.eq.s32.totalorder %s555_s14, 3 }
   0xe   : > { %p556_p9 = scmp.ge.s32.totalorder %s747_s12, 1  ;;  %p97_p10 = scmp.lt.s32.totalorder %s747_s12, 5 }
   0xf   : > { %p823_p11 = por %p84_p7, %p54_p0  ;;  %p827_p12 = por %p90_p8, %p60_p3 }
  0x10   : > { %p831_p13 = pnand %p556_p9, %p97_p10  ;;  %s636_s26 = scalar_lea.hbm %s1241_s0, 16 }
  0x11   : > { %s1247_s21 = scalar_select %p823_p11, 1, 0 }
  0x12   : > { %s1248_s22 = scalar_select %p827_p12, 1, 0 }
  0x13   : > { %p588_p1 = pneg %p831_p13  ;;  %p637_p0 = scmp.ne.s32.totalorder %s1241_s0, %s636_s26 }
  0x14   : > { %p643_p9 = scmp.lt.u32.totalorder %s636_s26, %s1241_s0 }
  0x15   : > { %p589_p2 = pnand %p588_p1, %p1244_p4 }
  0x17   : > { %p638_p3 = pneg %p589_p2 }
  0x19   : > { %p639_p7 = pnand %p638_p3, %p637_p0 }
  0x1b   : > { %p640_p8 = pneg %p639_p7 }
  0x1d   : > { %p645_p10 = pnand %p643_p9, %p640_p8 }
  0x1f   : > { %648 = shalt.err (!%p645_p10)
}
  0x20   : > { %s749_s3 = smov [#allocation2]   ;;  %p558_p1 = scmp.ge.s32.totalorder %s747_s12, 4 }
  0x21   : > { %591 = dma.hbm_to_smem (!%p589_p2), %s1241_s0, 16, %s749_s3, [#allocation5]  }
  0x22   : > { %115 = sbr.rel (%p558_p1) target bundleno = 76 (0x4c), region = 20 }
  0x29   : > { %118 = sbr.rel (!%p810_p5) target bundleno = 76 (0x4c), region = 24  ;;  %s119_s6 = sand.u32 (%p810_p5), 1, %s743_s11  }
  0x2a   : > { %s560_s7 = sshll.u32 (%p810_p5), %s747_s12, 6  ;;  %s559_s8 = sshll.u32 (%p810_p5), %s119_s6, 9 }
  0x2b   : > { %s125_s14 = ssub.s32 (%p810_p5), 196, %s560_s7  ;;  %s859_s24 = scalar_lea.sflag (%p810_p5), [#allocation3], %s119_s6 }
  0x2c   : > { %p126_p0 = scmp.lt.s32.totalorder (%p810_p5), %s125_s14, 64  ;;  %s123_s25 = scalar_lea.vmem (%p810_p5), [#allocation6], %s559_s8 }
  0x30   : > { %s1259_s14 = smov (!%p126_p0, %s125_s14), 64 }
  0x31   : > { %s856_s16 = sshll.u32 %s1259_s14, 7 }
  0x32   : > { %s130_s17 = ssub.s32 8192, %s856_s16 }
  0x33   : > { %131 = vsyncadd %s859_s24, %s130_s17  ;;  %p562_p5 = scmp.ne.s32.totalorder %s856_s16, 0  ;;  %s580_s19 = sshll.u32 %s747_s12, 13 }
  0x34   : > { %s867_s28 = scalar_lea.hbm %s1242_s1, %s580_s19  ;;  %s136_s29 = sshll.u32 %s123_s25, 4  ;;  %s869_s29 = int_to_ptr.vmem [resolvable:$true] %s136_s29 }
  0x35   : > { %s649_s30 = scalar_lea.hbm %s867_s28, %s856_s16  ;;  %s653_s5 = scalar_lea.hbm %s1242_s1, 25088 }
  0x36   : > { %p650_p2 = scmp.ne.s32.totalorder %s867_s28, %s649_s30  ;;  %p654_p8 = scmp.lt.u32.totalorder %s867_s28, %s1242_s1 }
  0x37   : > { %p655_p9 = scmp.lt.u32.totalorder %s653_s5, %s649_s30  ;;  %p657_p1 = scmp.lt.u32.totalorder %s649_s30, %s867_s28 }
  0x38   : > { %p651_p3 = pnand %p650_p2, %p562_p5 }
  0x39   : > { %p656_p10 = por %p655_p9, %p654_p8 }
  0x3a   : > { %p652_p7 = pneg %p651_p3 }
  0x3b   : > { %p658_p0 = por %p657_p1, %p656_p10 }
  0x3d   : > { %p659_p4 = pnand %p658_p0, %p652_p7 }
  0x3f   : > { %662 = shalt.err (!%p659_p4)
}
  0x40   : > { %s663_s8 = scalar_lea.vmem %s869_s29, %s856_s16  ;;  %s750_s14 = smov [#allocation6]  }
  0x41   : > { %p664_p2 = scmp.ne.s32.totalorder %s869_s29, %s663_s8  ;;  %s667_s17 = sshll.u32 %s750_s14, 4  ;;  %s668_s17 = int_to_ptr.vmem [resolvable:$false] %s667_s17 }
  0x42   : > { %s669_s25 = scalar_lea.vmem %s668_s17, 16384  ;;  %p670_p11 = scmp.lt.s32.totalorder %s869_s29, %s668_s17 }
  0x43   : > { %p665_p3 = pnand %p664_p2, %p562_p5  ;;  %p671_p8 = scmp.lt.s32.totalorder %s669_s25, %s663_s8 }
  0x45   : > { %p666_p12 = pneg %p665_p3  ;;  %p672_p9 = por %p671_p8, %p670_p11 }
  0x47   : > { %p673_p10 = pnand %p672_p9, %p666_p12 }
  0x49   : > { %676 = shalt.err (!%p673_p10)
}
  0x4a   : > { %s751_s19 = smov 128   ;;  %s752_s26 = smov 8  }
  0x4b   : > { %142 = dma.hbm_to_vmem [thread:$0]  (%p562_p5), %s867_s28, %s856_s16, %s869_s29, %s859_s24, %s751_s19, %s751_s19, %s752_s26  }
  0x4c PF: > { %148 = sbr.rel (%p831_p13) target bundleno = 167 (0xa7), region = 28  ;;  %p1250_p4 = scmp.eq.s32.totalorder (!%p831_p13), %s792_s13, 0 }
  0x53   : > { %722 = dma.done.wait (%p1250_p4), [#allocation5], 16   ;;  %p1251_p11 = pmov %p1250_p4 }
  0x54   : > { %s903_s27 = sand.u32 1, %s739_s10  }
  0x55   : > { %724 = vsyncadd (%p1251_p11), [#allocation5], 4294967280  ;;  %s568_s30 = sshll.u32 %s903_s27, 9  ;;  %s155_s16 = scalar_lea.sflag [#allocation3], %s903_s27 }
  0x56   : > { %s909_s24 = scalar_lea.vmem [#allocation6], %s568_s30 }
  0x57   : > { %726 = dma.done.wait (%p816_p6), %s155_s16, 8192  }
  0x58   : > { %728 = vsyncadd (%p816_p6), %s155_s16, 4294959104 }
  0x59   : > { %163 = sfence }
  0x5a   : > { %s254_s23 = sld [smem:[#allocation2]]  ;;  %s570_s28 = sld [smem:[#allocation2 + $0x1]]  ;;  %v190_v0 = vld [vmem:[%s909_s24] sm:$0xff]  ;;  %v191_v1 = vld [vmem:[%s909_s24 + $0x8] sm:$0xff]  ;;  %v192_v2 = vld [vmem:[%s909_s24 + $0x10] sm:$0xff] }
  0x5b   : > { %v193_v3 = vld [vmem:[%s909_s24 + $0x18] sm:$0xff]  ;;  %v194_v4 = vld [vmem:[%s909_s24 + $0x20] sm:$0xff]  ;;  %v195_v5 = vld [vmem:[%s909_s24 + $0x28] sm:$0xff]  ;;  %s952_s20 = scalar_lea.vmem [#allocation7], %s568_s30  ;;  %s451_s29 = scalar_lea.sflag [#allocation4], %s903_s27 }
  0x5c   : > { %v196_v6 = vld [vmem:[%s909_s24 + $0x30] sm:$0xff]  ;;  %v197_v8 = vld [vmem:[%s909_s24 + $0x38] sm:$0xff]  ;;  %v198_v13 = vld [vmem:[%s909_s24 + $0x40] sm:$0xff]  ;;  %p1252_p6 = scmp.ne.s32.totalorder %s1247_s21, 0 }
  0x5d   : > { %v199_v18 = vld [vmem:[%s909_s24 + $0x48] sm:$0xff]  ;;  %v200_v19 = vld [vmem:[%s909_s24 + $0x50] sm:$0xff]  ;;  %v201_v20 = vld [vmem:[%s909_s24 + $0x58] sm:$0xff]  ;;  %s572_s3 = sshll.u32 (%p1252_p6), %s792_s13, 6 }
  0x5e   : > { %v202_v25 = vld [vmem:[%s909_s24 + $0x60] sm:$0xff]  ;;  %v203_v26 = vld [vmem:[%s909_s24 + $0x68] sm:$0xff]  ;;  %v204_v27 = vld [vmem:[%s909_s24 + $0x70] sm:$0xff]  ;;  %s459_s4 = ssub.s32 (%p1252_p6), 196, %s572_s3 }
  0x5f   : > { %v205_v32 = vld [vmem:[%s909_s24 + $0x78] sm:$0xff]  ;;  %v206_v37 = vld [vmem:[%s909_s24 + $0x80] sm:$0xff]  ;;  %v207_v42 = vld [vmem:[%s909_s24 + $0x88] sm:$0xff]  ;;  %p460_p12 = scmp.lt.s32.totalorder (%p1252_p6), %s459_s4, 64 }
  0x60   : > { %v922_v7 = vstv %s254_s23  ;;  %v926_v10 = vstv %s570_s28  ;;  %v208_v43 = vld [vmem:[%s909_s24 + $0x90] sm:$0xff]  ;;  %v209_v44 = vld [vmem:[%s909_s24 + $0x98] sm:$0xff] }
  0x61   : > { %v256_v9 = vmul.f32 %v922_v7, %v190_v0  ;;  %v257_v11 = vmul.f32 %v922_v7, %v191_v1  ;;  %v258_v12 = vmul.f32 %v922_v7, %v192_v2  ;;  %v259_v14 = vmul.f32 %v922_v7, %v193_v3  ;;  %v210_v49 = vld [vmem:[%s909_s24 + $0xa0] sm:$0xff]  ;;  %v211_v50 = vld [vmem:[%s909_s24 + $0xa8] sm:$0xff]  ;;  %v212_v51 = vld [vmem:[%s909_s24 + $0xb0] sm:$0xff] }
  0x62   : > { %v260_v15 = vmul.f32 %v922_v7, %v194_v4  ;;  %v261_v16 = vmul.f32 %v922_v7, %v195_v5  ;;  %v262_v17 = vmul.f32 %v922_v7, %v196_v6  ;;  %v263_v24 = vmul.f32 %v922_v7, %v197_v8  ;;  %v213_v56 = vld [vmem:[%s909_s24 + $0xb8] sm:$0xff]  ;;  %v214_v61 = vld [vmem:[%s909_s24 + $0xc0] sm:$0xff]  ;;  %v215_v2 = vld [vmem:[%s909_s24 + $0xc8] sm:$0xff] }
  0x63   : > { %v322_v21 = vadd.f32 %v926_v10, %v256_v9  ;;  %v323_v22 = vadd.f32 %v926_v10, %v257_v11  ;;  %v324_v23 = vadd.f32 %v926_v10, %v258_v12  ;;  %v325_v28 = vadd.f32 %v926_v10, %v259_v14  ;;  %v216_v3 = vld [vmem:[%s909_s24 + $0xd0] sm:$0xff]  ;;  %v217_v4 = vld [vmem:[%s909_s24 + $0xd8] sm:$0xff]  ;;  %v218_v11 = vld [vmem:[%s909_s24 + $0xe0] sm:$0xff] }
  0x64   : > { %v326_v29 = vadd.f32 %v926_v10, %v260_v15  ;;  %v327_v30 = vadd.f32 %v926_v10, %v261_v16  ;;  %v328_v31 = vadd.f32 %v926_v10, %v262_v17  ;;  %v329_v33 = vadd.f32 %v926_v10, %v263_v24  ;;  %v219_v12 = vld [vmem:[%s909_s24 + $0xe8] sm:$0xff] }
  0x65   : > { %386 = vst [vmem:[%s952_s20] sm:$0xff] %v322_v21  ;;  %387 = vst [vmem:[%s952_s20 + $0x8] sm:$0xff] %v323_v22  ;;  %v264_v34 = vmul.f32 %v922_v7, %v198_v13  ;;  %v265_v35 = vmul.f32 %v922_v7, %v199_v18  ;;  %v266_v36 = vmul.f32 %v922_v7, %v200_v19  ;;  %v220_v13 = vld [vmem:[%s909_s24 + $0xf0] sm:$0xff]  ;;  %v221_v18 = vld [vmem:[%s909_s24 + $0xf8] sm:$0xff] }
  0x66   : > { %388 = vst [vmem:[%s952_s20 + $0x10] sm:$0xff] %v324_v23  ;;  %389 = vst [vmem:[%s952_s20 + $0x18] sm:$0xff] %v325_v28  ;;  %v267_v38 = vmul.f32 %v922_v7, %v201_v20  ;;  %v268_v39 = vmul.f32 %v922_v7, %v202_v25  ;;  %v269_v40 = vmul.f32 %v922_v7, %v203_v26  ;;  %v222_v23 = vld [vmem:[%s909_s24 + $0x100] sm:$0xff]  ;;  %v223_v28 = vld [vmem:[%s909_s24 + $0x108] sm:$0xff] }
  0x67   : > { %390 = vst [vmem:[%s952_s20 + $0x20] sm:$0xff] %v326_v29  ;;  %391 = vst [vmem:[%s952_s20 + $0x28] sm:$0xff] %v327_v30  ;;  %v270_v41 = vmul.f32 %v922_v7, %v204_v27  ;;  %v330_v45 = vadd.f32 %v926_v10, %v264_v34  ;;  %v331_v46 = vadd.f32 %v926_v10, %v265_v35  ;;  %v224_v29 = vld [vmem:[%s909_s24 + $0x110] sm:$0xff]  ;;  %v225_v30 = vld [vmem:[%s909_s24 + $0x118] sm:$0xff] }
  0x68   : > { %392 = vst [vmem:[%s952_s20 + $0x30] sm:$0xff] %v328_v31  ;;  %393 = vst [vmem:[%s952_s20 + $0x38] sm:$0xff] %v329_v33  ;;  %v332_v47 = vadd.f32 %v926_v10, %v266_v36  ;;  %v271_v48 = vmul.f32 %v922_v7, %v205_v32  ;;  %v333_v52 = vadd.f32 %v926_v10, %v267_v38  ;;  %v226_v35 = vld [vmem:[%s909_s24 + $0x120] sm:$0xff]  ;;  %v227_v36 = vld [vmem:[%s909_s24 + $0x128] sm:$0xff] }
  0x69   : > { %v334_v53 = vadd.f32 %v926_v10, %v268_v39  ;;  %v335_v54 = vadd.f32 %v926_v10, %v269_v40  ;;  %v336_v55 = vadd.f32 %v926_v10, %v270_v41  ;;  %394 = vst [vmem:[%s952_s20 + $0x40] sm:$0xff] %v330_v45  ;;  %395 = vst [vmem:[%s952_s20 + $0x48] sm:$0xff] %v331_v46 }
  0x6a   : > { %396 = vst [vmem:[%s952_s20 + $0x50] sm:$0xff] %v332_v47  ;;  %v337_v57 = vadd.f32 %v926_v10, %v271_v48  ;;  %v272_v58 = vmul.f32 %v922_v7, %v206_v37  ;;  %v273_v59 = vmul.f32 %v922_v7, %v207_v42  ;;  %v274_v60 = vmul.f32 %v922_v7, %v208_v43  ;;  %v228_v37 = vld [vmem:[%s909_s24 + $0x130] sm:$0xff]  ;;  %v229_v42 = vld [vmem:[%s909_s24 + $0x138] sm:$0xff]  ;;  %v230_v47 = vld [vmem:[%s909_s24 + $0x140] sm:$0xff] }
  0x6b   : > { %397 = vst [vmem:[%s952_s20 + $0x58] sm:$0xff] %v333_v52  ;;  %398 = vst [vmem:[%s952_s20 + $0x60] sm:$0xff] %v334_v53  ;;  %v275_v62 = vmul.f32 %v922_v7, %v209_v44  ;;  %v276_v63 = vmul.f32 %v922_v7, %v210_v49  ;;  %v277_v0 = vmul.f32 %v922_v7, %v211_v50  ;;  %v231_v52 = vld [vmem:[%s909_s24 + $0x148] sm:$0xff]  ;;  %v232_v53 = vld [vmem:[%s909_s24 + $0x150] sm:$0xff] }
  0x6c   : > { %399 = vst [vmem:[%s952_s20 + $0x68] sm:$0xff] %v335_v54  ;;  %400 = vst [vmem:[%s952_s20 + $0x70] sm:$0xff] %v336_v55  ;;  %v278_v1 = vmul.f32 %v922_v7, %v212_v51  ;;  %v338_v5 = vadd.f32 %v926_v10, %v272_v58  ;;  %v339_v6 = vadd.f32 %v926_v10, %v273_v59  ;;  %v233_v54 = vld [vmem:[%s909_s24 + $0x158] sm:$0xff]  ;;  %v234_v59 = vld [vmem:[%s909_s24 + $0x160] sm:$0xff] }
  0x6d   : > { %401 = vst [vmem:[%s952_s20 + $0x78] sm:$0xff] %v337_v57  ;;  %v340_v8 = vadd.f32 %v926_v10, %v274_v60  ;;  %v279_v9 = vmul.f32 %v922_v7, %v213_v56  ;;  %v341_v14 = vadd.f32 %v926_v10, %v275_v62  ;;  %v342_v15 = vadd.f32 %v926_v10, %v276_v63  ;;  %v235_v60 = vld [vmem:[%s909_s24 + $0x168] sm:$0xff] }
  0x6e   : > { %v343_v16 = vadd.f32 %v926_v10, %v277_v0  ;;  %v344_v17 = vadd.f32 %v926_v10, %v278_v1  ;;  %402 = vst [vmem:[%s952_s20 + $0x80] sm:$0xff] %v338_v5  ;;  %403 = vst [vmem:[%s952_s20 + $0x88] sm:$0xff] %v339_v6  ;;  %v280_v20 = vmul.f32 %v922_v7, %v214_v61  ;;  %v236_v61 = vld [vmem:[%s909_s24 + $0x170] sm:$0xff] }
  0x6f   : > { %404 = vst [vmem:[%s952_s20 + $0x90] sm:$0xff] %v340_v8  ;;  %v345_v19 = vadd.f32 %v926_v10, %v279_v9  ;;  %v281_v21 = vmul.f32 %v922_v7, %v215_v2  ;;  %v282_v22 = vmul.f32 %v922_v7, %v216_v3  ;;  %405 = vst [vmem:[%s952_s20 + $0x98] sm:$0xff] %v341_v14  ;;  %v237_v2 = vld [vmem:[%s909_s24 + $0x178] sm:$0xff]  ;;  %v238_v8 = vld [vmem:[%s909_s24 + $0x180] sm:$0xff] }
  0x70   : > { %406 = vst [vmem:[%s952_s20 + $0xa0] sm:$0xff] %v342_v15  ;;  %407 = vst [vmem:[%s952_s20 + $0xa8] sm:$0xff] %v343_v16  ;;  %v283_v24 = vmul.f32 %v922_v7, %v217_v4  ;;  %v284_v25 = vmul.f32 %v922_v7, %v218_v11  ;;  %v285_v26 = vmul.f32 %v922_v7, %v219_v12  ;;  %v239_v14 = vld [vmem:[%s909_s24 + $0x188] sm:$0xff]  ;;  %v240_v15 = vld [vmem:[%s909_s24 + $0x190] sm:$0xff] }
  0x71   : > { %408 = vst [vmem:[%s952_s20 + $0xb0] sm:$0xff] %v344_v17  ;;  %v286_v27 = vmul.f32 %v922_v7, %v220_v13  ;;  %409 = vst [vmem:[%s952_s20 + $0xb8] sm:$0xff] %v345_v19  ;;  %v346_v31 = vadd.f32 %v926_v10, %v280_v20  ;;  %v347_v32 = vadd.f32 %v926_v10, %v281_v21  ;;  %v241_v16 = vld [vmem:[%s909_s24 + $0x198] sm:$0xff]  ;;  %v242_v21 = vld [vmem:[%s909_s24 + $0x1a0] sm:$0xff] }
  0x72   : > { %v348_v33 = vadd.f32 %v926_v10, %v282_v22  ;;  %v287_v34 = vmul.f32 %v922_v7, %v221_v18  ;;  %v349_v38 = vadd.f32 %v926_v10, %v283_v24  ;;  %v350_v39 = vadd.f32 %v926_v10, %v284_v25  ;;  %v243_v22 = vld [vmem:[%s909_s24 + $0x1a8] sm:$0xff] }
  0x73   : > { %v351_v40 = vadd.f32 %v926_v10, %v285_v26  ;;  %v352_v41 = vadd.f32 %v926_v10, %v286_v27  ;;  %410 = vst [vmem:[%s952_s20 + $0xc0] sm:$0xff] %v346_v31  ;;  %411 = vst [vmem:[%s952_s20 + $0xc8] sm:$0xff] %v347_v32  ;;  %v288_v44 = vmul.f32 %v922_v7, %v222_v23  ;;  %v244_v23 = vld [vmem:[%s909_s24 + $0x1b0] sm:$0xff] }
  0x74   : > { %412 = vst [vmem:[%s952_s20 + $0xd0] sm:$0xff] %v348_v33  ;;  %v353_v43 = vadd.f32 %v926_v10, %v287_v34  ;;  %v289_v45 = vmul.f32 %v922_v7, %v223_v28  ;;  %v290_v46 = vmul.f32 %v922_v7, %v224_v29  ;;  %413 = vst [vmem:[%s952_s20 + $0xd8] sm:$0xff] %v349_v38  ;;  %v245_v28 = vld [vmem:[%s909_s24 + $0x1b8] sm:$0xff]  ;;  %v246_v33 = vld [vmem:[%s909_s24 + $0x1c0] sm:$0xff] }
  0x75   : > { %414 = vst [vmem:[%s952_s20 + $0xe0] sm:$0xff] %v350_v39  ;;  %415 = vst [vmem:[%s952_s20 + $0xe8] sm:$0xff] %v351_v40  ;;  %v291_v48 = vmul.f32 %v922_v7, %v225_v30  ;;  %v292_v49 = vmul.f32 %v922_v7, %v226_v35  ;;  %v293_v50 = vmul.f32 %v922_v7, %v227_v36  ;;  %v247_v38 = vld [vmem:[%s909_s24 + $0x1c8] sm:$0xff]  ;;  %v248_v39 = vld [vmem:[%s909_s24 + $0x1d0] sm:$0xff] }
  0x76   : > { %416 = vst [vmem:[%s952_s20 + $0xf0] sm:$0xff] %v352_v41  ;;  %v294_v51 = vmul.f32 %v922_v7, %v228_v37  ;;  %417 = vst [vmem:[%s952_s20 + $0xf8] sm:$0xff] %v353_v43  ;;  %v354_v55 = vadd.f32 %v926_v10, %v288_v44  ;;  %v355_v56 = vadd.f32 %v926_v10, %v289_v45  ;;  %v249_v40 = vld [vmem:[%s909_s24 + $0x1d8] sm:$0xff]  ;;  %v250_v45 = vld [vmem:[%s909_s24 + $0x1e0] sm:$0xff] }
  0x77   : > { %v356_v57 = vadd.f32 %v926_v10, %v290_v46  ;;  %v295_v58 = vmul.f32 %v922_v7, %v229_v42  ;;  %v357_v62 = vadd.f32 %v926_v10, %v291_v48  ;;  %v358_v63 = vadd.f32 %v926_v10, %v292_v49  ;;  %v251_v46 = vld [vmem:[%s909_s24 + $0x1e8] sm:$0xff] }
  0x78   : > { %v359_v0 = vadd.f32 %v926_v10, %v293_v50  ;;  %v360_v1 = vadd.f32 %v926_v10, %v294_v51  ;;  %418 = vst [vmem:[%s952_s20 + $0x100] sm:$0xff] %v354_v55  ;;  %419 = vst [vmem:[%s952_s20 + $0x108] sm:$0xff] %v355_v56  ;;  %v296_v4 = vmul.f32 %v922_v7, %v230_v47  ;;  %v252_v47 = vld [vmem:[%s909_s24 + $0x1f0] sm:$0xff] }
  0x79   : > { %420 = vst [vmem:[%s952_s20 + $0x110] sm:$0xff] %v356_v57  ;;  %v361_v3 = vadd.f32 %v926_v10, %v295_v58  ;;  %v297_v5 = vmul.f32 %v922_v7, %v231_v52  ;;  %v298_v6 = vmul.f32 %v922_v7, %v232_v53  ;;  %421 = vst [vmem:[%s952_s20 + $0x118] sm:$0xff] %v357_v62  ;;  %v253_v52 = vld [vmem:[%s909_s24 + $0x1f8] sm:$0xff] }
  0x7a   : > { %422 = vst [vmem:[%s952_s20 + $0x120] sm:$0xff] %v358_v63  ;;  %423 = vst [vmem:[%s952_s20 + $0x128] sm:$0xff] %v359_v0  ;;  %v299_v9 = vmul.f32 %v922_v7, %v233_v54  ;;  %v300_v11 = vmul.f32 %v922_v7, %v234_v59  ;;  %v301_v12 = vmul.f32 %v922_v7, %v235_v60 }
  0x7b   : > { %424 = vst [vmem:[%s952_s20 + $0x130] sm:$0xff] %v360_v1  ;;  %v302_v13 = vmul.f32 %v922_v7, %v236_v61  ;;  %425 = vst [vmem:[%s952_s20 + $0x138] sm:$0xff] %v361_v3  ;;  %v362_v17 = vadd.f32 %v926_v10, %v296_v4  ;;  %v363_v18 = vadd.f32 %v926_v10, %v297_v5 }
  0x7c   : > { %v364_v19 = vadd.f32 %v926_v10, %v298_v6  ;;  %v303_v20 = vmul.f32 %v922_v7, %v237_v2  ;;  %v365_v24 = vadd.f32 %v926_v10, %v299_v9  ;;  %v366_v25 = vadd.f32 %v926_v10, %v300_v11 }
  0x7d   : > { %v367_v26 = vadd.f32 %v926_v10, %v301_v12  ;;  %v368_v27 = vadd.f32 %v926_v10, %v302_v13  ;;  %426 = vst [vmem:[%s952_s20 + $0x140] sm:$0xff] %v362_v17  ;;  %427 = vst [vmem:[%s952_s20 + $0x148] sm:$0xff] %v363_v18  ;;  %v304_v30 = vmul.f32 %v922_v7, %v238_v8 }
  0x7e   : > { %428 = vst [vmem:[%s952_s20 + $0x150] sm:$0xff] %v364_v19  ;;  %v369_v29 = vadd.f32 %v926_v10, %v303_v20  ;;  %v305_v31 = vmul.f32 %v922_v7, %v239_v14  ;;  %v306_v32 = vmul.f32 %v922_v7, %v240_v15  ;;  %429 = vst [vmem:[%s952_s20 + $0x158] sm:$0xff] %v365_v24 }
  0x7f   : > { %430 = vst [vmem:[%s952_s20 + $0x160] sm:$0xff] %v366_v25  ;;  %431 = vst [vmem:[%s952_s20 + $0x168] sm:$0xff] %v367_v26  ;;  %v307_v34 = vmul.f32 %v922_v7, %v241_v16  ;;  %v308_v35 = vmul.f32 %v922_v7, %v242_v21  ;;  %v309_v36 = vmul.f32 %v922_v7, %v243_v22 }
  0x80   : > { %432 = vst [vmem:[%s952_s20 + $0x170] sm:$0xff] %v368_v27  ;;  %v310_v37 = vmul.f32 %v922_v7, %v244_v23  ;;  %433 = vst [vmem:[%s952_s20 + $0x178] sm:$0xff] %v369_v29  ;;  %v370_v41 = vadd.f32 %v926_v10, %v304_v30  ;;  %v371_v42 = vadd.f32 %v926_v10, %v305_v31 }
  0x81   : > { %v372_v43 = vadd.f32 %v926_v10, %v306_v32  ;;  %v311_v44 = vmul.f32 %v922_v7, %v245_v28  ;;  %v373_v48 = vadd.f32 %v926_v10, %v307_v34  ;;  %v374_v49 = vadd.f32 %v926_v10, %v308_v35 }
  0x82   : > { %v375_v50 = vadd.f32 %v926_v10, %v309_v36  ;;  %v376_v51 = vadd.f32 %v926_v10, %v310_v37  ;;  %434 = vst [vmem:[%s952_s20 + $0x180] sm:$0xff] %v370_v41  ;;  %435 = vst [vmem:[%s952_s20 + $0x188] sm:$0xff] %v371_v42  ;;  %v312_v54 = vmul.f32 %v922_v7, %v246_v33 }
  0x83   : > { %436 = vst [vmem:[%s952_s20 + $0x190] sm:$0xff] %v372_v43  ;;  %v377_v53 = vadd.f32 %v926_v10, %v311_v44  ;;  %v313_v55 = vmul.f32 %v922_v7, %v247_v38  ;;  %v314_v56 = vmul.f32 %v922_v7, %v248_v39  ;;  %437 = vst [vmem:[%s952_s20 + $0x198] sm:$0xff] %v373_v48 }
  0x84   : > { %438 = vst [vmem:[%s952_s20 + $0x1a0] sm:$0xff] %v374_v49  ;;  %439 = vst [vmem:[%s952_s20 + $0x1a8] sm:$0xff] %v375_v50  ;;  %v315_v57 = vmul.f32 %v922_v7, %v249_v40  ;;  %v316_v58 = vmul.f32 %v922_v7, %v250_v45  ;;  %v317_v59 = vmul.f32 %v922_v7, %v251_v46  ;;  %457 = sbr.rel (!%p1252_p6) target bundleno = 167 (0xa7), region = 40 }
  0x85   : > { %440 = vst [vmem:[%s952_s20 + $0x1b0] sm:$0xff] %v376_v51  ;;  %v318_v60 = vmul.f32 %v922_v7, %v252_v47  ;;  %441 = vst [vmem:[%s952_s20 + $0x1b8] sm:$0xff] %v377_v53  ;;  %v378_v61 = vadd.f32 %v926_v10, %v312_v54  ;;  %v379_v62 = vadd.f32 %v926_v10, %v313_v55 }
  0x86   : > { %v380_v63 = vadd.f32 %v926_v10, %v314_v56  ;;  %v319_v0 = vmul.f32 %v922_v7, %v253_v52  ;;  %v381_v1 = vadd.f32 %v926_v10, %v315_v57  ;;  %v382_v2 = vadd.f32 %v926_v10, %v316_v58 }
  0x87   : > { %v383_v3 = vadd.f32 %v926_v10, %v317_v59  ;;  %v384_v4 = vadd.f32 %v926_v10, %v318_v60  ;;  %442 = vst [vmem:[%s952_s20 + $0x1c0] sm:$0xff] %v378_v61  ;;  %443 = vst [vmem:[%s952_s20 + $0x1c8] sm:$0xff] %v379_v62 }
  0x88   : > { %444 = vst [vmem:[%s952_s20 + $0x1d0] sm:$0xff] %v380_v63  ;;  %v385_v5 = vadd.f32 %v926_v10, %v319_v0  ;;  %445 = vst [vmem:[%s952_s20 + $0x1d8] sm:$0xff] %v381_v1 }
  0x89   : > { %446 = vst [vmem:[%s952_s20 + $0x1e0] sm:$0xff] %v382_v2  ;;  %447 = vst [vmem:[%s952_s20 + $0x1e8] sm:$0xff] %v383_v3 }
  0x8a   : > { %448 = vst [vmem:[%s952_s20 + $0x1f0] sm:$0xff] %v384_v4  ;;  %449 = vst [vmem:[%s952_s20 + $0x1f8] sm:$0xff] %v385_v5 }
  0x8b   : > { %s1261_s4 = smov (!%p460_p12, %s459_s4), 64 }
  0x8c   : > { %s1183_s5 = sshll.u32 %s1261_s4, 7 }
  0x8d   : > { %s464_s6 = ssub.s32 8192, %s1183_s5 }
  0x8e   : > { %465 = vsyncadd %s451_s29, %s464_s6  ;;  %p574_p13 = scmp.ne.s32.totalorder %s1183_s5, 0  ;;  %s581_s21 = sshll.u32 %s792_s13, 13 }
  0x8f   : > { %s1193_s14 = scalar_lea.hbm %s1243_s2, %s581_s21  ;;  %s470_s17 = sshll.u32 %s952_s20, 4  ;;  %s1196_s17 = int_to_ptr.vmem [resolvable:$true] %s470_s17 }
  0x90   : > { %s677_s25 = scalar_lea.vmem %s1196_s17, %s1183_s5  ;;  %s753_s19 = smov [#allocation7]  }
  0x91   : > { %p678_p5 = scmp.ne.s32.totalorder %s1196_s17, %s677_s25  ;;  %s681_s26 = sshll.u32 %s753_s19, 4  ;;  %s682_s26 = int_to_ptr.vmem [resolvable:$false] %s681_s26 }
  0x92   : > { %s683_s13 = scalar_lea.vmem %s682_s26, 16384  ;;  %p684_p0 = scmp.lt.s32.totalorder %s1196_s17, %s682_s26 }
  0x93   : > { %p679_p7 = pnand %p678_p5, %p574_p13  ;;  %p685_p2 = scmp.lt.s32.totalorder %s683_s13, %s677_s25 }
  0x95   : > { %p680_p1 = pneg %p679_p7  ;;  %p686_p3 = por %p685_p2, %p684_p0 }
  0x97   : > { %p687_p8 = pnand %p686_p3, %p680_p1 }
  0x99   : > { %690 = shalt.err (!%p687_p8)
}
  0x9a   : > { %s691_s30 = scalar_lea.hbm %s1193_s14, %s1183_s5  ;;  %s695_s23 = scalar_lea.hbm %s1243_s2, 25088 }
  0x9b   : > { %p692_p9 = scmp.ne.s32.totalorder %s1193_s14, %s691_s30  ;;  %p696_p11 = scmp.lt.u32.totalorder %s1193_s14, %s1243_s2 }
  0x9c   : > { %p697_p6 = scmp.lt.u32.totalorder %s695_s23, %s691_s30  ;;  %p699_p5 = scmp.lt.u32.totalorder %s691_s30, %s1193_s14 }
  0x9d   : > { %p693_p10 = pnand %p692_p9, %p574_p13 }
  0x9e   : > { %p698_p12 = por %p697_p6, %p696_p11 }
  0x9f   : > { %p694_p4 = pneg %p693_p10 }
  0xa0   : > { %p700_p7 = por %p699_p5, %p698_p12 }
  0xa2   : > { %p701_p1 = pnand %p700_p7, %p694_p4 }
  0xa4   : > { %704 = shalt.err (!%p701_p1)
}
  0xa5   : > { %s754_s3 = smov 128   ;;  %s755_s4 = smov 8  }
  0xa6   : > { %476 = dma.vmem_to_hbm [thread:$0]  (%p574_p13), %s1196_s17, %s1183_s5, %s1193_s14, %s451_s29, %s754_s3, %s754_s3, %s755_s4  }
  0xa7 PF: > { %p598_p0 = scmp.ge.s32.totalorder %s747_s12, 2  ;;  %s485_s6 = sand.u32 1, %s735_s9  }
  0xa8   : > { %p1253_p2 = scmp.ne.s32.totalorder %s1248_s22, 0  ;;  %s486_s21 = scalar_lea.sflag [#allocation4], %s485_s6 }
  0xaa   : > { %p593_p3 = pnand %p598_p0, %p1253_p2 }
  0xac   : > { %730 = dma.done.wait (!%p593_p3), %s486_s21, 8192  }
  0xad   : > { %732 = vsyncadd (!%p593_p3), %s486_s21, 4294959104  ;;  %p16_p8 = scmp.ge.s32.totalorder %s796_s15, 6   ;;  %s1254_s9 = smov %s739_s10 }
  0xae   : > { %s1255_s10 = smov %s743_s11  ;;  %s1256_s11 = smov %s808_s18 }
  0xaf   : > { %s1257_s12 = smov %s796_s15  ;;  %18 = sbr.rel (!%p16_p8) target bundleno = 6 (0x6), region = 78 }
  0xb6   :  { %491 = vsyncpa [#allocation3], 1 }
  0xb7   :  { %493 = vsyncpa [#allocation3 + $0x1], 1 }
  0xb8   :  { %494 = vsyncpa [#allocation4], 1 }
  0xb9   :  { %496 = vsyncpa [#allocation4 + $0x1], 1 }
  0xba   :  { %497 = vsyncpa [#allocation5], 1 }
  0xbb   :  { %499 = vsyncpa [#allocation5 + $0x1], 1 }

</bundles_post_ra>
